<compile_context>
chip_gen: v7x
topology: tpu7x:2x2x1
jax: 0.10.0
libtpu: 0.0.40
codegen_flags: <defaults>
</compile_context>

<pallas_src>
import jax
import jax.numpy as jnp
from jax import lax
from jax.experimental import pallas as pl
from jax.experimental.pallas import tpu as pltpu


def _round_up(x, m):
    return ((x + m - 1) // m) * m


# ----------------------------------------------------------------------------
# Pallas kernels: ClassificationHead  (full-extent Conv2d == matmul, bias fused)
# ----------------------------------------------------------------------------
def _head_kernel_single(x_ref, w_ref, b_ref, o_ref):
    # One shot: whole K fits in VMEM. x: [tm, K] bf16, w: [tn, K] bf16, b: [1, tn] f32.
    o_ref[...] = (
        lax.dot_general(
            x_ref[...],
            w_ref[...],
            dimension_numbers=(((1,), (1,)), ((), ())),   # contract on K; w is trans-B
            preferred_element_type=jnp.float32,
        )
        + b_ref[...]
    )


def _head_kernel_tiled(x_ref, w_ref, b_ref, o_ref):
    # Tiled reduction: accumulate into the resident f32 output block (output block
    # index constant along the K axis, which is marked "arbitrary").
    k = pl.program_id(2)

    @pl.when(k == 0)
    def _():
        o_ref[...] = jnp.zeros_like(o_ref)

    o_ref[...] += lax.dot_general(
        x_ref[...],
        w_ref[...],
        dimension_numbers=(((1,), (1,)), ((), ())),
        preferred_element_type=jnp.float32,
    )

    @pl.when(k == pl.num_programs(2) - 1)
    def _():
        o_ref[...] += b_ref[...]


def prepare_classification_head(weight, bias, *, tk_max=4096, tm_cap=256):
    """One-time prep: layout/tiling plan + padded bf16 weight + padded f32 bias.

    weight: [num_classes, C, H, W] f32;  bias: [num_classes] f32.
    Doing this once (not per forward) removes the per-call pad/cast pass over W,
    which dominates HBM traffic for this GEMV-shaped head.
    """
    num_classes, C, H, W = weight.shape
    K = C * H * W

    # Lane-dense class padding; 256-wide class tiles when they fit exactly (v6e/v7x).
    ncls_pad = _round_up(num_classes, 128)
    tn = 256 if ncls_pad % 256 == 0 else 128

    # Reduction tiling: single full-extent step when K fits; otherwise split K so that
    # per-tile zero padding is bounded by <128 columns (no blow-up to tk_max multiples).
    k128 = _round_up(K, 128)
    if k128 <= tk_max:
        nk, tk, k_pad = 1, K, K            # full-extent K block, no padding at all
    else:
        nk = pl.cdiv(k128, tk_max)
        tk = _round_up(pl.cdiv(k128, nk), 128)
        k_pad = nk * tk

    w2d = weight.reshape(num_classes, K).astype(jnp.bfloat16)
    w_p = jnp.zeros((ncls_pad, k_pad), jnp.bfloat16).at[:num_classes, :K].set(w2d)
    b_p = (
        jnp.zeros((1, ncls_pad), jnp.float32)
        .at[0, :num_classes]
        .set(bias.astype(jnp.float32))
    )
    return {
        "w_p": w_p,
        "b_p": b_p,
        "num_classes": num_classes,
        "K": K,
        "ncls_pad": ncls_pad,
        "tn": tn,
        "nk": nk,
        "tk": tk,
        "k_pad": k_pad,
        "tm_cap": tm_cap,
    }


def classification_head(ft, head):
    """ft: [N, C, H, W] (bf16 preferred; cast if not).  Returns logits [N, num_classes].

    Equivalent to nn.Conv2d(C, num_classes, kernel_size=(H, W))(ft).squeeze(-1).squeeze(-1).
    """
    N = ft.shape[0]
    K, k_pad, nk, tk = head["K"], head["k_pad"], head["nk"], head["tk"]
    tn, ncls_pad, tm_cap = head["tn"], head["ncls_pad"], head["tm_cap"]

    x2d = ft.reshape(N, K)
    if x2d.dtype != jnp.bfloat16:
        x2d = x2d.astype(jnp.bfloat16)

    # Batch tiling only when the batch can feed multiple tiles (bounds per-step x
    # traffic to tm*K and gives v7x's second TensorCore parallel work); otherwise a
    # single full-extent batch block — no row padding.
    if N >= 2 * tm_cap:
        tm = tm_cap
        n_pad = _round_up(N, tm)
    else:
        tm = N
        n_pad = N

    if (n_pad != N) or (k_pad != K):
        x_p = jnp.zeros((n_pad, k_pad), jnp.bfloat16).at[:N, :K].set(x2d)
    else:
        x_p = x2d                           # no extra pass over the activation map

    kernel = _head_kernel_single if nk == 1 else _head_kernel_tiled

    out = pl.pallas_call(
        kernel,
        out_shape=jax.ShapeDtypeStruct((n_pad, ncls_pad), jnp.float32),
        grid_spec=pltpu.PrefetchScalarGridSpec(
            num_scalar_prefetch=0,
            grid=(n_pad // tm, ncls_pad // tn, nk),
            in_specs=[
                pl.BlockSpec((tm, tk), lambda i, j, k: (i, k)),   # activations
                pl.BlockSpec((tn, tk), lambda i, j, k: (j, k)),   # weights (trans-B)
                pl.BlockSpec((1, tn), lambda i, j, k: (0, j)),    # bias
            ],
            out_specs=pl.BlockSpec((tm, tn), lambda i, j, k: (i, j)),
        ),
        compiler_params=pltpu.CompilerParams(
            dimension_semantics=("parallel", "parallel", "arbitrary"),
        ),
    )(x_p, head["w_p"], head["b_p"])

    return out[:N, : head["num_classes"]]


# ----------------------------------------------------------------------------
# Deterministic stand-ins for the external (undefined) submodules — plain JAX glue.
# TODO(synk): backbone2D, backbone3D and CFAMFusion are external modules not defined in
# model/TSN/classification.py; these stand-ins only reproduce the shape contract
# (list of 2D feature maps, 3D features with D==1, fused map with inter_channels_fusion
# channels) so the defined forward() plumbing can run.
# ----------------------------------------------------------------------------
def _avg_pool2x2_nchw(x):
    N, C, H, W = x.shape
    return x.reshape(N, C, H // 2, 2, W // 2, 2).mean(axis=(3, 5))


def _net2d_standin(key_frames, params):
    # key_frames: [N, 3, H, W] -> list of feature maps; only the last matters here.
    x = _avg_pool2x2_nchw(key_frames)                       # [N, 3, H/2, W/2]
    f = jnp.einsum("nchw,oc->nohw", x, params["w2d"])       # 1x1-conv-like projection
    return [f]


def _net3d_standin(clips, params):
    # clips: [N, 3, T, H, W] -> [N, C3d, 1, H/2, W/2]  (D == 1, as asserted in __init__)
    x = clips.mean(axis=2)                                  # temporal pooling
    x = _avg_pool2x2_nchw(x)
    f = jnp.einsum("nchw,oc->nohw", x, params["w3d"])
    return f[:, :, None, :, :]


def _cfam_fusion_standin(ft_2d_list, ft_3d, params):
    fused_in = jnp.concatenate([ft_2d_list[-1], ft_3d], axis=1)
    # Producer emits bf16 so the head consumes it directly (no extra cast pass).
    fused = jnp.einsum("nchw,oc->nohw", fused_in, params["wfuse"]).astype(jnp.bfloat16)
    return [fused]                                          # fusion returns a list


# ----------------------------------------------------------------------------
# Full ClassificationModel.forward
# ----------------------------------------------------------------------------
def classification_model_forward(clips, params, head):
    # clips: [N, 3, T, H, W]  (NCDHW, like PyTorch)
    key_frames = clips[:, :, -1, :, :]                      # [N, 3, H, W]
    ft_2d = _net2d_standin(key_frames, params)              # list of NCHW maps
    ft_3d = _net3d_standin(clips, params).squeeze(2)        # [N, C3d, H', W']
    ft = _cfam_fusion_standin(ft_2d, ft_3d, params)         # list; last is fused map
    # head(ft[-1]).squeeze(-1).squeeze(-1)  — Pallas kernel:
    return classification_head(ft[-1], head)


def init_params(key, *, num_classes, c2d, c3d, cfuse, hf, wf):
    k = jax.random.split(key, 5)
    return {
        "w2d": jax.random.normal(k[0], (c2d, 3), jnp.float32) * 0.1,
        "w3d": jax.random.normal(k[1], (c3d, 3), jnp.float32) * 0.1,
        "wfuse": jax.random.normal(k[2], (cfuse, c2d + c3d), jnp.float32) * 0.1,
        # ClassificationHead: Conv2d(cfuse, num_classes, kernel_size=(hf, wf))
        "head_w": jax.random.normal(k[3], (num_classes, cfuse, hf, wf), jnp.float32)
        * 0.05,
        "head_b": jax.random.normal(k[4], (num_classes,), jnp.float32) * 0.01,
    }


if __name__ == "__main__":
    key = jax.random.PRNGKey(0)
    N, T, IMG = 2, 8, 16
    NUM_CLASSES = 16
    C2D, C3D, CFUSE = 16, 16, 32
    HF = WF = IMG // 2  # feature spatial size produced by the stand-in backbones

    k_clips, k_params = jax.random.split(key)
    clips = jax.random.normal(k_clips, (N, 3, T, IMG, IMG), jnp.float32)
    params = init_params(
        k_params, num_classes=NUM_CLASSES, c2d=C2D, c3d=C3D, cfuse=CFUSE, hf=HF, wf=WF
    )

    # One-time weight prep (layout, padding, bf16 cast) — NOT on the per-call path.
    head = prepare_classification_head(params["head_w"], params["head_b"])

    logits = classification_model_forward(clips, params, head)
    logits = jax.block_until_ready(logits)
    assert logits.shape == (N, NUM_CLASSES)

    # Reference check for the head (full-extent conv == flattened matmul).
    # The kernel feeds bf16 operands to the MXU with f32 accumulation, so the
    # reference uses the same bf16-rounded operands.
    key_frames = clips[:, :, -1, :, :]
    ft2d = _net2d_standin(key_frames, params)
    ft3d = _net3d_standin(clips, params).squeeze(2)
    fused = _cfam_fusion_standin(ft2d, ft3d, params)[-1]            # bf16
    x_bf = fused.reshape(N, -1).astype(jnp.float32)
    w_bf = (
        params["head_w"].reshape(NUM_CLASSES, -1).astype(jnp.bfloat16).astype(jnp.float32)
    )
    ref = x_bf @ w_bf.T + params["head_b"][None, :]
    assert jnp.allclose(logits, ref, atol=1e-2, rtol=1e-2)

    print("KERNEL_OK")
</pallas_src>

<mosaic_0001>
module attributes {stable_mosaic.version = 11 : i64} {
  func.func @_head_kernel_single(%arg0: i32, %arg1: i32, %arg2: i32, %arg3: memref<2x2048xbf16, #tpu.memory_space<vmem>>, %arg4: memref<128x2048xbf16, #tpu.memory_space<vmem>>, %arg5: memref<1x128xf32, #tpu.memory_space<vmem>>, %arg6: memref<2x128xf32, #tpu.memory_space<vmem>>) attributes {dimension_semantics = [#tpu.dimension_semantics<parallel>, #tpu.dimension_semantics<parallel>, #tpu.dimension_semantics<arbitrary>], iteration_bounds = array<i64: 1, 1, 1>, scalar_prefetch = 0 : i64, scratch_operands = 0 : i64, tpu.core_type = #tpu.core_type<tc>, window_params = [{transform_indices = @transform_0, window_bounds = array<i64: 2, 2048>}, {transform_indices = @transform_1, window_bounds = array<i64: 128, 2048>}, {transform_indices = @transform_2, window_bounds = array<i64: 1, 128>}, {transform_indices = @transform_3, window_bounds = array<i64: 2, 128>}]} {
    %c0 = arith.constant 0 : index
    %c0_0 = arith.constant 0 : index
    %0 = vector.load %arg3[%c0, %c0_0] : memref<2x2048xbf16, #tpu.memory_space<vmem>>, vector<2x2048xbf16>
    %c0_1 = arith.constant 0 : index
    %c0_2 = arith.constant 0 : index
    %1 = vector.load %arg4[%c0_1, %c0_2] : memref<128x2048xbf16, #tpu.memory_space<vmem>>, vector<128x2048xbf16>
    %cst = arith.constant dense<0.000000e+00> : vector<2x128xf32>
    %2 = tpu.matmul %0, %1, %cst {dimension_numbers = #tpu.dot_dimension_numbers<[1], [1], [0], [0], [0, 0, 1, 0], [], []>} : vector<2x2048xbf16>, vector<128x2048xbf16>, vector<2x128xf32> -> vector<2x128xf32>
    %c0_3 = arith.constant 0 : index
    %c0_4 = arith.constant 0 : index
    %3 = vector.load %arg5[%c0_3, %c0_4] : memref<1x128xf32, #tpu.memory_space<vmem>>, vector<1x128xf32>
    %4 = vector.broadcast %3 : vector<1x128xf32> to vector<2x128xf32>
    %5 = arith.addf %2, %4 : vector<2x128xf32>
    %c0_5 = arith.constant 0 : index
    %c0_6 = arith.constant 0 : index
    %6 = vector.load %arg6[%c0_5, %c0_6] : memref<2x128xf32, #tpu.memory_space<vmem>>, vector<2x128xf32>
    tpu.vector_store %arg6[%c0_5, %c0_6], %5 {strides = array<i32>} : memref<2x128xf32, #tpu.memory_space<vmem>>, vector<2x128xf32>,
    return
  }
  func.func @transform_0(%arg0: i32, %arg1: i32, %arg2: i32) -> (i32, i32) {
    %c0_i32 = arith.constant 0 : i32
    return %arg0, %arg2 : i32, i32
  }
  func.func @transform_1(%arg0: i32, %arg1: i32, %arg2: i32) -> (i32, i32) {
    %c0_i32 = arith.constant 0 : i32
    return %arg1, %arg2 : i32, i32
  }
  func.func @transform_2(%arg0: i32, %arg1: i32, %arg2: i32) -> (i32, i32) {
    %c0_i32 = arith.constant 0 : i32
    %c0_i32_0 = arith.constant 0 : i32
    return %c0_i32, %arg1 : i32, i32
  }
  func.func @transform_3(%arg0: i32, %arg1: i32, %arg2: i32) -> (i32, i32) {
    %c0_i32 = arith.constant 0 : i32
    return %arg0, %arg1 : i32, i32
  }
}

</mosaic_0001>

<bundles_post_ra>
// kernel: tpu_custom_call.1
= control target key start
LH: loop header
LB: loop body
LE: loop exit
PB: predicated region body
PF: predicated region fallthrough
CT: control target
= control target key end

     0   :  { %8 = vsyncpa [#allocation3], 0  ;;  %s1653_s0 = inlined_call_operand.hbm [shape: bf16[2,2048], index: 0, kind: input, shape index: {}]   ;;  %s1654_s1 = inlined_call_operand.hbm [shape: bf16[128,2048], index: 1, kind: input, shape index: {}]   ;;  %s1655_s2 = inlined_call_operand.vmem [shape: f32[1,128], index: 2, kind: input, shape index: {}]   ;;  %s1656_s3 = inlined_call_operand.hbm [shape: f32[2,128], index: 3, kind: output, shape index: {}]  }
   0x1   :  { %9 = vsyncpa [#allocation6], 0 }
   0x2   :  { %10 = vsyncpa [#allocation4], 0  ;;  %s1507_s12 = smov [#allocation2]   ;;  %s1508_s14 = smov [#allocation5]  }
   0x3   :  { %s17_s13 = sshll.u32 %s1507_s12, 4  ;;  %s26_s15 = sshll.u32 %s1508_s14, 4  ;;  %s18_s13 = int_to_ptr.vmem [resolvable:$true] %s17_s13  ;;  %s1533_s15 = int_to_ptr.vmem [resolvable:$true] %s26_s15 }
   0x4   :  { %s1435_s18 = scalar_lea.hbm %s1653_s0, 256 }
   0x5   :  { %p1436_p0 = scmp.ne.s32.totalorder %s1653_s0, %s1435_s18  ;;  %p1439_p1 = scmp.lt.u32.totalorder %s1435_s18, %s1653_s0 }
   0x7   :  { %p1441_p2 = pnand %p1439_p1, %p1436_p0 }
   0x9   :  { %1444 = shalt.err (!%p1441_p2)
}
   0xa   :  { %s1445_s23 = scalar_lea.vmem %s18_s13, 256  ;;  %p1450_p4 = scmp.lt.s32.totalorder %s18_s13, %s18_s13 }
   0xb   :  { %p1446_p3 = scmp.ne.s32.totalorder %s18_s13, %s1445_s23  ;;  %p1451_p5 = scmp.lt.s32.totalorder %s1445_s23, %s1445_s23 }
   0xd   :  { %p1452_p6 = por %p1451_p5, %p1450_p4 }
   0xf   :  { %p1453_p7 = pnand %p1452_p6, %p1446_p3 }
  0x11   :  { %1456 = shalt.err (!%p1453_p7)
}
  0x12   :  { %20 = dma.hbm_to_vmem [thread:$0]  %s1653_s0, 256, %s18_s13, [#allocation3]  }
  0x13   :  { %s1457_s28 = scalar_lea.hbm %s1654_s1, 16384 }
  0x14   :  { %p1458_p8 = scmp.ne.s32.totalorder %s1654_s1, %s1457_s28  ;;  %p1461_p9 = scmp.lt.u32.totalorder %s1457_s28, %s1654_s1 }
  0x16   :  { %p1463_p10 = pnand %p1461_p9, %p1458_p8 }
  0x18   :  { %1466 = shalt.err (!%p1463_p10)
}
  0x19   :  { %s1467_s6 = scalar_lea.vmem %s1533_s15, 16384  ;;  %p1472_p12 = scmp.lt.s32.totalorder %s1533_s15, %s1533_s15 }
  0x1a   :  { %p1468_p11 = scmp.ne.s32.totalorder %s1533_s15, %s1467_s6  ;;  %p1473_p13 = scmp.lt.s32.totalorder %s1467_s6, %s1467_s6 }
  0x1c   :  { %p1474_p0 = por %p1473_p13, %p1472_p12 }
  0x1e   :  { %p1475_p1 = pnand %p1474_p0, %p1468_p11 }
  0x20   :  { %1478 = shalt.err (!%p1475_p1)
}
  0x21   :  { %s1509_s0 = smov 1024   ;;  %s1510_s7 = smov 64  }
  0x22   :  { %32 = dma.hbm_to_vmem [thread:$0]  %s1654_s1, 16384, %s1533_s15, [#allocation6], %s1509_s0, %s1509_s0, %s1510_s7  }
  0x23   :  { %1501 = dma.done.wait [#allocation3], 256  }
  0x24   :  { %1502 = vsyncadd [#allocation3], 4294967040 }
  0x25   :  { %1503 = dma.done.wait [#allocation6], 16384  }
  0x26   :  { %1504 = vsyncadd [#allocation6], 4294950912  ;;  %v1511_v0 = vmov 1966171168   ;;  %v185_v2 = vlaneseq  ;;  %v44_v3 = vld [vmem:[#allocation5] sm:$0xff]  ;;  %v1566_v28 = vld [vmem:[#allocation2] sm:$0xff] }
  0x27   :  { %v183_v1 = vunpack.c.l.s4 %v1511_v0  ;;  %v52_v4 = vld [vmem:[#allocation5 + $0x40] sm:$0xff]  ;;  %v1572_v30 = vld [vmem:[#allocation2 + $0x8] sm:$0xff]  ;;  %s1512_s11 = smov [#allocation7]  }
  0x28   :  { %v48_v5 = vld [vmem:[#allocation5 + $0x20] sm:$0xff]  ;;  %v1274_v6 = vcombine.high %v44_v3, %v52_v4  ;;  %v1273_v8 = vcombine.low %v44_v3, %v52_v4  ;;  %v186_v18 = vshrl.u32 %v185_v2, 7  ;;  %s1262_s12 = sshll.u32 %s1512_s11, 4  ;;  %s1263_s12 = int_to_ptr.vmem [resolvable:$true] %s1262_s12 }
  0x29   :  { %v56_v7 = vld [vmem:[#allocation5 + $0x60] sm:$0xff]  ;;  %v184_v17 = vunpack.c.0.s8 %v183_v1  ;;  %s1479_s13 = scalar_lea.vmem %s1263_s12, 32  ;;  %p1484_p3 = scmp.lt.s32.totalorder %s1263_s12, %s1263_s12 }
  0x2a   :  { %v60_v9 = vld [vmem:[#allocation5 + $0x80] sm:$0xff]  ;;  %v1282_v11 = vcombine.high %v48_v5, %v56_v7  ;;  %v1281_v12 = vcombine.low %v48_v5, %v56_v7  ;;  %935 = vmatprep.subr.bf16.mxu1 %v1274_v6  ;;  %p1480_p2 = scmp.ne.s32.totalorder %s1263_s12, %s1479_s13  ;;  %p1485_p4 = scmp.lt.s32.totalorder %s1479_s13, %s1479_s13 }
  0x2b   :  { %v68_v10 = vld [vmem:[#allocation5 + $0xc0] sm:$0xff]  ;;  %936 = vmatpush1.bf16.xpose.msra.mxu1 %v1273_v8  ;;  %v1564_v23 = vsub.s32 %v184_v17, %v186_v18  ;;  %v181_v18 = vcombine.high %v1566_v28, %v1566_v28 }
  0x2c   :  { %v1290_v13 = vcombine.high %v60_v9, %v68_v10  ;;  %v64_v14 = vld [vmem:[#allocation5 + $0xa0] sm:$0xff]  ;;  %1095 = vmatprep.subr.bf16.mxu0 %v1282_v11  ;;  %v1289_v24 = vcombine.low %v60_v9, %v68_v10  ;;  %p1486_p5 = por %p1485_p4, %p1484_p3 }
  0x2d   :  { %v72_v15 = vld [vmem:[#allocation5 + $0xe0] sm:$0xff]  ;;  %1096 = vmatpush1.bf16.xpose.msra.mxu0 %v1281_v12  ;;  %v1570_v29 = vrot.slane %v1566_v28, %v1564_v23  ;;  %v1576_v31 = vrot.slane %v1572_v30, %v1564_v23  ;;  %v45_v12 = vld [vmem:[#allocation5 + $0x8] sm:$0xff] }
  0x2e   :  { %v1298_v16 = vcombine.high %v64_v14, %v72_v15  ;;  %937 = vmatprep.subr.bf16.mxu1 %v1290_v13  ;;  %v76_v19 = vld [vmem:[#allocation5 + $0x100] sm:$0xff]  ;;  %v1297_v25 = vcombine.low %v64_v14, %v72_v15  ;;  %v53_v13 = vld [vmem:[#allocation5 + $0x48] sm:$0xff]  ;;  %p1487_p6 = pnand %p1486_p5, %p1480_p2 }
  0x2f   :  { %v84_v20 = vld [vmem:[#allocation5 + $0x140] sm:$0xff]  ;;  %v196_v32 = vcombine.high %v1570_v29, %v1570_v29  ;;  %v245_v35 = vcombine.high %v1576_v31, %v1576_v31  ;;  %v49_v14 = vld [vmem:[#allocation5 + $0x28] sm:$0xff] }
  0x30   :  { %1097 = vmatprep.subr.bf16.mxu0 %v1298_v16  ;;  %v80_v21 = vld [vmem:[#allocation5 + $0x120] sm:$0xff]  ;;  %v1306_v26 = vcombine.high %v76_v19, %v84_v20  ;;  %v1305_v39 = vcombine.low %v76_v19, %v84_v20  ;;  %v57_v15 = vld [vmem:[#allocation5 + $0x68] sm:$0xff]  ;;  %v1276_v19 = vcombine.high %v45_v12, %v53_v13  ;;  %v230_v20 = vcombine.high %v1572_v30, %v1572_v30 }
  0x31   :  { %v88_v22 = vld [vmem:[#allocation5 + $0x160] sm:$0xff]  ;;  %v1583_v38 = vrot.slane %v196_v32, %v1564_v23  ;;  %v1586_v40 = vrot.slane %v245_v35, %v1564_v23  ;;  %v65_v28 = vld [vmem:[#allocation5 + $0xa8] sm:$0xff]  ;;  %v1275_v30 = vcombine.low %v45_v12, %v53_v13  ;;  %v1602_v35 = vrot.slane %v1576_v31, %v1564_v23 }
  0x32   :  { %v1314_v27 = vcombine.high %v80_v21, %v88_v22  ;;  %v92_v33 = vld [vmem:[#allocation5 + $0x180] sm:$0xff]  ;;  %v1313_v41 = vcombine.low %v80_v21, %v88_v22  ;;  %v1284_v21 = vcombine.high %v49_v14, %v57_v15  ;;  %v195_v22 = vrot.slane %v181_v18, %v1564_v23  ;;  %v73_v32 = vld [vmem:[#allocation5 + $0xe8] sm:$0xff] }
  0x33   :  { %938 = vmatpush1.bf16.xpose.msra.mxu1 %v1289_v24  ;;  %v100_v34 = vld [vmem:[#allocation5 + $0x1c0] sm:$0xff]  ;;  %967 = vmatprep.mubr.bf16.mxu1 %v1583_v38  ;;  %v244_v24 = vrot.slane %v230_v20, %v1564_v23  ;;  %v145_v12 = vld [vmem:[#allocation5 + $0x328] sm:$0xff] }
  0x34   :  { %939 = vmatprep.subr.bf16.mxu1 %v1306_v26  ;;  %v96_v36 = vld [vmem:[#allocation5 + $0x1a0] sm:$0xff]  ;;  %v1322_v42 = vcombine.high %v92_v33, %v100_v34  ;;  %1127 = vmatprep.mubr.bf16.mxu0 %v1586_v40  ;;  %v1321_v48 = vcombine.low %v92_v33, %v100_v34  ;;  %v69_v26 = vld [vmem:[#allocation5 + $0xc8] sm:$0xff]  ;;  %v197_v33 = vcombine.high %v195_v22, %v195_v22 }
  0x35   :  { %1098 = vmatpush1.bf16.xpose.msra.mxu0 %v1297_v25  ;;  %v104_v37 = vld [vmem:[#allocation5 + $0x1e0] sm:$0xff]  ;;  %v61_v25 = vld [vmem:[#allocation5 + $0x88] sm:$0xff]  ;;  %v246_v34 = vcombine.high %v244_v24, %v244_v24  ;;  %v1619_v31 = vrot.slane %v244_v24, %v1564_v23 }
  0x36   :  { %1099 = vmatprep.subr.bf16.mxu0 %v1314_v27  ;;  %v1330_v43 = vcombine.high %v96_v36, %v104_v37  ;;  %v108_v44 = vld [vmem:[#allocation5 + $0x200] sm:$0xff]  ;;  %v1329_v49 = vcombine.low %v96_v36, %v104_v37  ;;  %v1598_v27 = vrot.slane %v1570_v29, %v1564_v23  ;;  %v1605_v36 = vrot.slane %v195_v22, %v1564_v23  ;;  %v153_v13 = vld [vmem:[#allocation5 + $0x368] sm:$0xff] }
  0x37   :  { %v116_v45 = vld [vmem:[#allocation5 + $0x240] sm:$0xff]  ;;  %v1283_v37 = vcombine.low %v49_v14, %v57_v15  ;;  %v1611_v29 = vrot.slane %v246_v34, %v1564_v23  ;;  %v157_v18 = vld [vmem:[#allocation5 + $0x388] sm:$0xff]  ;;  %v1379_v24 = vcombine.low %v145_v12, %v153_v13  ;;  %v58_v34 = vld [vmem:[#allocation5 + $0x70] sm:$0xff] }
  0x38   :  { %v112_v46 = vld [vmem:[#allocation5 + $0x220] sm:$0xff]  ;;  %v1338_v50 = vcombine.high %v108_v44, %v116_v45  ;;  %v1337_v56 = vcombine.low %v108_v44, %v116_v45  ;;  %v277_v44 = vcombine.high %v1586_v40, %v1586_v40  ;;  %v77_v45 = vld [vmem:[#allocation5 + $0x108] sm:$0xff] }
  0x39   :  { %v120_v47 = vld [vmem:[#allocation5 + $0x260] sm:$0xff]  ;;  %v161_v20 = vld [vmem:[#allocation5 + $0x3a8] sm:$0xff] }
  0x3a   :  { %v1346_v51 = vcombine.high %v112_v46, %v120_v47  ;;  %v124_v52 = vld [vmem:[#allocation5 + $0x280] sm:$0xff]  ;;  %v1345_v57 = vcombine.low %v112_v46, %v120_v47  ;;  %v85_v46 = vld [vmem:[#allocation5 + $0x148] sm:$0xff] }
  0x3b   :  { %940 = vmatpush1.bf16.xpose.msra.mxu1 %v1305_v39  ;;  %v132_v53 = vld [vmem:[#allocation5 + $0x2c0] sm:$0xff]  ;;  %v1292_v39 = vcombine.high %v61_v25, %v69_v26  ;;  %v81_v47 = vld [vmem:[#allocation5 + $0x128] sm:$0xff]  ;;  %v1308_v40 = vcombine.high %v77_v45, %v85_v46 }
  0x3c   :  { %941 = vmatprep.subr.bf16.mxu1 %v1322_v42  ;;  %v128_v54 = vld [vmem:[#allocation5 + $0x2a0] sm:$0xff]  ;;  %v1354_v58 = vcombine.high %v124_v52, %v132_v53  ;;  %v1353_v0 = vcombine.low %v124_v52, %v132_v53  ;;  %v228_v42 = vcombine.high %v1583_v38, %v1583_v38  ;;  %v89_v38 = vld [vmem:[#allocation5 + $0x168] sm:$0xff] }
  0x3d   :  { %1100 = vmatpush1.bf16.xpose.msra.mxu0 %v1313_v41  ;;  %v136_v55 = vld [vmem:[#allocation5 + $0x2e0] sm:$0xff]  ;;  %v1608_v41 = vrot.slane %v197_v33, %v1564_v23  ;;  %v93_v23 = vld [vmem:[#allocation5 + $0x188] sm:$0xff]  ;;  %v50_v33 = vld [vmem:[#allocation5 + $0x30] sm:$0xff] }
  0x3e   :  { %1101 = vmatprep.subr.bf16.mxu0 %v1330_v43  ;;  %v1362_v59 = vcombine.high %v128_v54, %v136_v55  ;;  %v140_v60 = vld [vmem:[#allocation5 + $0x300] sm:$0xff]  ;;  %v1361_v1 = vcombine.low %v128_v54, %v136_v55  ;;  %v1300_v43 = vcombine.high %v65_v28, %v73_v32  ;;  %v97_v52 = vld [vmem:[#allocation5 + $0x1a8] sm:$0xff]  ;;  %v1307_v54 = vcombine.low %v77_v45, %v85_v46  ;;  %v66_v46 = vld [vmem:[#allocation5 + $0xb0] sm:$0xff] }
  0x3f   :  { %v148_v61 = vld [vmem:[#allocation5 + $0x340] sm:$0xff]  ;;  %v105_v53 = vld [vmem:[#allocation5 + $0x1e8] sm:$0xff]  ;;  %v1315_v55 = vcombine.low %v81_v47, %v89_v38  ;;  %v226_v45 = vcombine.high %v1598_v27, %v1598_v27 }
  0x40   :  { %v144_v62 = vld [vmem:[#allocation5 + $0x320] sm:$0xff]  ;;  %v1370_v2 = vcombine.high %v140_v60, %v148_v61  ;;  %v1369_v8 = vcombine.low %v140_v60, %v148_v61  ;;  %v113_v60 = vld [vmem:[#allocation5 + $0x228] sm:$0xff] }
  0x41   :  { %v152_v63 = vld [vmem:[#allocation5 + $0x360] sm:$0xff]  ;;  %v121_v61 = vld [vmem:[#allocation5 + $0x268] sm:$0xff] }
  0x42   :  { %v1378_v3 = vcombine.high %v144_v62, %v152_v63  ;;  %v156_v4 = vld [vmem:[#allocation5 + $0x380] sm:$0xff]  ;;  %v1377_v9 = vcombine.low %v144_v62, %v152_v63  ;;  %v1331_v63 = vcombine.low %v97_v52, %v105_v53 }
  0x43   :  { %942 = vmatpush1.bf16.xpose.msra.mxu1 %v1321_v48  ;;  %v164_v5 = vld [vmem:[#allocation5 + $0x3c0] sm:$0xff]  ;;  %v1291_v48 = vcombine.low %v61_v25, %v69_v26 }
  0x44   :  { %943 = vmatprep.subr.bf16.mxu1 %v1338_v50  ;;  %v160_v6 = vld [vmem:[#allocation5 + $0x3a0] sm:$0xff]  ;;  %v1386_v10 = vcombine.high %v156_v4, %v164_v5  ;;  %v1385_v16 = vcombine.low %v156_v4, %v164_v5  ;;  %v1316_v50 = vcombine.high %v81_v47, %v89_v38  ;;  %v129_v4 = vld [vmem:[#allocation5 + $0x2a8] sm:$0xff]  ;;  %v74_v47 = vld [vmem:[#allocation5 + $0xf0] sm:$0xff]  ;;  %v275_v38 = vcombine.high %v1602_v35, %v1602_v35 }
  0x45   :  { %1102 = vmatpush1.bf16.xpose.msra.mxu0 %v1329_v49  ;;  %v168_v7 = vld [vmem:[#allocation5 + $0x3e0] sm:$0xff]  ;;  %v1299_v49 = vcombine.low %v65_v28, %v73_v32  ;;  %v137_v5 = vld [vmem:[#allocation5 + $0x2e8] sm:$0xff]  ;;  %v46_v28 = vld [vmem:[#allocation5 + $0x10] sm:$0xff] }
  0x46   :  { %1103 = vmatprep.subr.bf16.mxu0 %v1346_v51  ;;  %v1394_v11 = vcombine.high %v160_v6, %v168_v7  ;;  %v1393_v17 = vcombine.low %v160_v6, %v168_v7  ;;  %v101_v51 = vld [vmem:[#allocation5 + $0x1c8] sm:$0xff]  ;;  %v1347_v7 = vcombine.low %v113_v60, %v121_v61  ;;  %v1363_v15 = vcombine.low %v129_v4, %v137_v5  ;;  %v54_v32 = vld [vmem:[#allocation5 + $0x50] sm:$0xff] }
  0x47   :  { %v1323_v62 = vcombine.low %v93_v23, %v101_v51 }
  0x4b   :  { %944 = vmatpush1.bf16.xpose.msra.mxu1 %v1337_v56  ;;  %v1324_v56 = vcombine.high %v93_v23, %v101_v51  ;;  %v78_v23 = vld [vmem:[#allocation5 + $0x110] sm:$0xff] }
  0x4c   :  { %945 = vmatprep.subr.bf16.mxu1 %v1354_v58  ;;  %v109_v58 = vld [vmem:[#allocation5 + $0x208] sm:$0xff]  ;;  %v86_v51 = vld [vmem:[#allocation5 + $0x150] sm:$0xff] }
  0x4d   :  { %1104 = vmatpush1.bf16.xpose.msra.mxu0 %v1345_v57  ;;  %v1332_v57 = vcombine.high %v97_v52, %v105_v53  ;;  %v90_v52 = vld [vmem:[#allocation5 + $0x170] sm:$0xff] }
  0x4e   :  { %1105 = vmatprep.subr.bf16.mxu0 %v1362_v59  ;;  %v117_v59 = vld [vmem:[#allocation5 + $0x248] sm:$0xff] }
  0x4f   :  { %v1339_v6 = vcombine.low %v109_v58, %v117_v59 }
  0x53   :  { %946 = vmatpush1.bf16.xpose.msra.mxu1 %v1353_v0  ;;  %v1340_v0 = vcombine.high %v109_v58, %v117_v59  ;;  %v98_v58 = vld [vmem:[#allocation5 + $0x1b0] sm:$0xff] }
  0x54   :  { %947 = vmatprep.subr.bf16.mxu1 %v1370_v2  ;;  %v125_v2 = vld [vmem:[#allocation5 + $0x288] sm:$0xff]  ;;  %v106_v59 = vld [vmem:[#allocation5 + $0x1f0] sm:$0xff] }
  0x55   :  { %1106 = vmatpush1.bf16.xpose.msra.mxu0 %v1361_v1  ;;  %v1348_v1 = vcombine.high %v113_v60, %v121_v61  ;;  %v1309_v60 = vcombine.low %v78_v23, %v86_v51 }
  0x56   :  { %1107 = vmatprep.subr.bf16.mxu0 %v1378_v3  ;;  %v133_v3 = vld [vmem:[#allocation5 + $0x2c8] sm:$0xff] }
  0x57   :  { %v1355_v14 = vcombine.low %v125_v2, %v133_v3 }
  0x5b   :  { %948 = vmatpush1.bf16.xpose.msra.mxu1 %v1369_v8  ;;  %v1356_v8 = vcombine.high %v125_v2, %v133_v3  ;;  %v114_v2 = vld [vmem:[#allocation5 + $0x230] sm:$0xff] }
  0x5c   :  { %949 = vmatprep.subr.bf16.mxu1 %v1386_v10  ;;  %v141_v10 = vld [vmem:[#allocation5 + $0x308] sm:$0xff]  ;;  %v122_v3 = vld [vmem:[#allocation5 + $0x270] sm:$0xff] }
  0x5d   :  { %1108 = vmatpush1.bf16.xpose.msra.mxu0 %v1377_v9  ;;  %v1364_v9 = vcombine.high %v129_v4, %v137_v5  ;;  %v1333_v5 = vcombine.low %v98_v58, %v106_v59 }
  0x5e   :  { %1109 = vmatprep.subr.bf16.mxu0 %v1394_v11  ;;  %v149_v11 = vld [vmem:[#allocation5 + $0x348] sm:$0xff] }
  0x5f   :  { %v1371_v22 = vcombine.low %v141_v10, %v149_v11 }
  0x63   :  { %950 = vmatpush1.bf16.xpose.msra.mxu1 %v1385_v16  ;;  %v1372_v16 = vcombine.high %v141_v10, %v149_v11  ;;  %v130_v10 = vld [vmem:[#allocation5 + $0x2b0] sm:$0xff] }
  0x64   :  { %975 = vmatprep.subr.bf16.mxu1 %v1276_v19  ;;  %v165_v19 = vld [vmem:[#allocation5 + $0x3c8] sm:$0xff]  ;;  %v138_v11 = vld [vmem:[#allocation5 + $0x2f0] sm:$0xff] }
  0x65   :  { %1110 = vmatpush1.bf16.xpose.msra.mxu0 %v1393_v17  ;;  %v1380_v17 = vcombine.high %v145_v12, %v153_v13  ;;  %v1388_v25 = vcombine.high %v157_v18, %v165_v19  ;;  %v1349_v13 = vcombine.low %v114_v2, %v122_v3 }
  0x66   :  { %1135 = vmatprep.subr.bf16.mxu0 %v1284_v21  ;;  %v169_v21 = vld [vmem:[#allocation5 + $0x3e8] sm:$0xff] }
  0x67   :  { %v1396_v26 = vcombine.high %v161_v20, %v169_v21 }
  0x6a   :  { %968 = vmatmul.mubr.bf16.vlgmr.msra.gmra.mrb[0].mxu1 %v1598_v27  ;;  %v82_v27 = vld [vmem:[#allocation5 + $0x130] sm:$0xff] }
  0x6b   :  { %976 = vmatpush1.bf16.xpose.msra.mxu1 %v1275_v30  ;;  %1007 = vmatprep.mubr.bf16.mxu1 %v228_v42  ;;  %v1387_v30 = vcombine.low %v157_v18, %v165_v19  ;;  %v1286_v42 = vcombine.high %v50_v33, %v58_v34  ;;  %v1317_v61 = vcombine.low %v82_v27, %v90_v52  ;;  %v146_v18 = vld [vmem:[#allocation5 + $0x330] sm:$0xff] }
  0x6c   :  { %1128 = vmatmul.mubr.bf16.vlgmr.msra.gmra.mrb[0].mxu0 %v1602_v35  ;;  %977 = vmatprep.subr.bf16.mxu1 %v1292_v39  ;;  %v1278_v39 = vcombine.high %v46_v28, %v54_v32  ;;  %v1301_v35 = vcombine.low %v66_v46, %v74_v47  ;;  %v154_v19 = vld [vmem:[#allocation5 + $0x370] sm:$0xff] }
  0x6d   :  { %1136 = vmatpush1.bf16.xpose.msra.mxu0 %v1283_v37  ;;  %1167 = vmatprep.mubr.bf16.mxu0 %v277_v44  ;;  %v1395_v37 = vcombine.low %v161_v20, %v169_v21  ;;  %v70_v44 = vld [vmem:[#allocation5 + $0xd0] sm:$0xff]  ;;  %v1365_v21 = vcombine.low %v130_v10, %v138_v11 }
  0x6e   :  { %1137 = vmatprep.subr.bf16.mxu0 %v1300_v43  ;;  %v62_v43 = vld [vmem:[#allocation5 + $0x90] sm:$0xff] }
  0x6f   :  { %v1293_v53 = vcombine.low %v62_v43, %v70_v44 }
  0x73   :  { %978 = vmatpush1.bf16.xpose.msra.mxu1 %v1291_v48  ;;  %v1277_v48 = vcombine.low %v46_v28, %v54_v32  ;;  %v162_v28 = vld [vmem:[#allocation5 + $0x3b0] sm:$0xff] }
  0x74   :  { %979 = vmatprep.subr.bf16.mxu1 %v1308_v40  ;;  %v1294_v40 = vcombine.high %v62_v43, %v70_v44  ;;  %v170_v32 = vld [vmem:[#allocation5 + $0x3f0] sm:$0xff]  ;;  %v51_v43 = vld [vmem:[#allocation5 + $0x38] sm:$0xff] }
  0x75   :  { %1138 = vmatpush1.bf16.xpose.msra.mxu0 %v1299_v49  ;;  %v1285_v49 = vcombine.low %v50_v33, %v58_v34  ;;  %v1381_v34 = vcombine.low %v146_v18, %v154_v19  ;;  %v59_v44 = vld [vmem:[#allocation5 + $0x78] sm:$0xff] }
  0x76   :  { %1139 = vmatprep.subr.bf16.mxu0 %v1316_v50  ;;  %v1302_v50 = vcombine.high %v66_v46, %v74_v47  ;;  %v1397_v46 = vcombine.low %v162_v28, %v170_v32 }
  0x7b   :  { %980 = vmatpush1.bf16.xpose.msra.mxu1 %v1307_v54  ;;  %v1310_v54 = vcombine.high %v78_v23, %v86_v51  ;;  %v1287_v51 = vcombine.low %v51_v43, %v59_v44 }
  0x7c   :  { %981 = vmatprep.subr.bf16.mxu1 %v1324_v56  ;;  %v94_v56 = vld [vmem:[#allocation5 + $0x190] sm:$0xff] }
  0x7d   :  { %1140 = vmatpush1.bf16.xpose.msra.mxu0 %v1315_v55  ;;  %v1318_v55 = vcombine.high %v82_v27, %v90_v52 }
  0x7e   :  { %1141 = vmatprep.subr.bf16.mxu0 %v1332_v57  ;;  %v102_v57 = vld [vmem:[#allocation5 + $0x1d0] sm:$0xff] }
  0x7f   :  { %v1325_v4 = vcombine.low %v94_v56, %v102_v57 }
  0x83   :  { %982 = vmatpush1.bf16.xpose.msra.mxu1 %v1323_v62  ;;  %v1326_v62 = vcombine.high %v94_v56, %v102_v57  ;;  %v83_v56 = vld [vmem:[#allocation5 + $0x138] sm:$0xff] }
  0x84   :  { %983 = vmatprep.subr.bf16.mxu1 %v1340_v0  ;;  %v110_v0 = vld [vmem:[#allocation5 + $0x210] sm:$0xff]  ;;  %v91_v57 = vld [vmem:[#allocation5 + $0x178] sm:$0xff] }
  0x85   :  { %1142 = vmatpush1.bf16.xpose.msra.mxu0 %v1331_v63  ;;  %v1334_v63 = vcombine.high %v98_v58, %v106_v59 }
  0x86   :  { %1143 = vmatprep.subr.bf16.mxu0 %v1348_v1  ;;  %v118_v1 = vld [vmem:[#allocation5 + $0x250] sm:$0xff] }
  0x87   :  { %v1341_v12 = vcombine.low %v110_v0, %v118_v1 }
  0x8b   :  { %984 = vmatpush1.bf16.xpose.msra.mxu1 %v1339_v6  ;;  %v1342_v6 = vcombine.high %v110_v0, %v118_v1  ;;  %v1319_v1 = vcombine.low %v83_v56, %v91_v57 }
  0x8c   :  { %985 = vmatprep.subr.bf16.mxu1 %v1356_v8  ;;  %v126_v8 = vld [vmem:[#allocation5 + $0x290] sm:$0xff] }
  0x8d   :  { %1144 = vmatpush1.bf16.xpose.msra.mxu0 %v1347_v7  ;;  %v1350_v7 = vcombine.high %v114_v2, %v122_v3 }
  0x8e   :  { %1145 = vmatprep.subr.bf16.mxu0 %v1364_v9  ;;  %v134_v9 = vld [vmem:[#allocation5 + $0x2d0] sm:$0xff] }
  0x8f   :  { %v1357_v20 = vcombine.low %v126_v8, %v134_v9 }
  0x93   :  { %986 = vmatpush1.bf16.xpose.msra.mxu1 %v1355_v14  ;;  %v1358_v14 = vcombine.high %v126_v8, %v134_v9 }
  0x94   :  { %987 = vmatprep.subr.bf16.mxu1 %v1372_v16  ;;  %v142_v16 = vld [vmem:[#allocation5 + $0x310] sm:$0xff] }
  0x95   :  { %1146 = vmatpush1.bf16.xpose.msra.mxu0 %v1363_v15  ;;  %v1366_v15 = vcombine.high %v130_v10, %v138_v11 }
  0x96   :  { %1147 = vmatprep.subr.bf16.mxu0 %v1380_v17  ;;  %v150_v17 = vld [vmem:[#allocation5 + $0x350] sm:$0xff] }
  0x97   :  { %v1373_v33 = vcombine.low %v142_v16, %v150_v17 }
  0x9b   :  { %988 = vmatpush1.bf16.xpose.msra.mxu1 %v1371_v22  ;;  %v1374_v22 = vcombine.high %v142_v16, %v150_v17 }
  0x9c   :  { %989 = vmatprep.subr.bf16.mxu1 %v1388_v25  ;;  %v158_v25 = vld [vmem:[#allocation5 + $0x390] sm:$0xff] }
  0x9d   :  { %1148 = vmatpush1.bf16.xpose.msra.mxu0 %v1379_v24  ;;  %v1382_v24 = vcombine.high %v146_v18, %v154_v19 }
  0x9e   :  { %1149 = vmatprep.subr.bf16.mxu0 %v1396_v26  ;;  %v166_v26 = vld [vmem:[#allocation5 + $0x3d0] sm:$0xff] }
  0xa3   :  { %990 = vmatpush1.bf16.xpose.msra.mxu1 %v1387_v30  ;;  %v1390_v30 = vcombine.high %v158_v25, %v166_v26 }
  0xa4   :  { %1015 = vmatprep.subr.bf16.mxu1 %v1278_v39  ;;  %v47_v39 = vld [vmem:[#allocation5 + $0x18] sm:$0xff] }
  0xa5   :  { %1150 = vmatpush1.bf16.xpose.msra.mxu0 %v1395_v37  ;;  %v1398_v37 = vcombine.high %v162_v28, %v170_v32 }
  0xa6   :  { %1175 = vmatprep.subr.bf16.mxu0 %v1286_v42  ;;  %v55_v42 = vld [vmem:[#allocation5 + $0x58] sm:$0xff] }
  0xa7   :  { %v1280_v47 = vcombine.high %v47_v39, %v55_v42  ;;  %v1279_v23 = vcombine.low %v47_v39, %v55_v42 }
  0xaa   :  { %1008 = vmatmul.mubr.bf16.vlgmr.msra.gmra.mrb[0].mxu1 %v226_v45  ;;  %v1389_v45 = vcombine.low %v158_v25, %v166_v26 }
  0xab   :  { %1016 = vmatpush1.bf16.xpose.msra.mxu1 %v1277_v48  ;;  %1047 = vmatprep.mubr.bf16.mxu1 %v1608_v41  ;;  %v63_v48 = vld [vmem:[#allocation5 + $0x98] sm:$0xff] }
  0xac   :  { %1168 = vmatmul.mubr.bf16.vlgmr.msra.gmra.mrb[0].mxu0 %v275_v38  ;;  %1017 = vmatprep.subr.bf16.mxu1 %v1294_v40  ;;  %v1288_v38 = vcombine.high %v51_v43, %v59_v44  ;;  %v67_v40 = vld [vmem:[#allocation5 + $0xb8] sm:$0xff] }
  0xad   :  { %1176 = vmatpush1.bf16.xpose.msra.mxu0 %v1285_v49  ;;  %1207 = vmatprep.mubr.bf16.mxu0 %v1611_v29  ;;  %v71_v49 = vld [vmem:[#allocation5 + $0xd8] sm:$0xff] }
  0xae   :  { %1177 = vmatprep.subr.bf16.mxu0 %v1302_v50  ;;  %v75_v50 = vld [vmem:[#allocation5 + $0xf8] sm:$0xff]  ;;  %v1296_v27 = vcombine.high %v63_v48, %v71_v49  ;;  %v1295_v58 = vcombine.low %v63_v48, %v71_v49  ;;  %v1272_v48 = vld [vmem:[%s1655_s2] ss:$0 sm:$0xff] }
  0xaf   :  { %v1304_v52 = vcombine.high %v67_v40, %v75_v50  ;;  %v1303_v59 = vcombine.low %v67_v40, %v75_v50 }
  0xb3   :  { %1018 = vmatpush1.bf16.xpose.msra.mxu1 %v1293_v53  ;;  %v229_v53 = vcombine.high %v1608_v41, %v1608_v41 }
  0xb4   :  { %1019 = vmatprep.subr.bf16.mxu1 %v1310_v54  ;;  %v79_v54 = vld [vmem:[#allocation5 + $0x118] sm:$0xff] }
  0xb5   :  { %1178 = vmatpush1.bf16.xpose.msra.mxu0 %v1301_v35  ;;  %v278_v35 = vcombine.high %v1611_v29, %v1611_v29  ;;  %v95_v29 = vld [vmem:[#allocation5 + $0x198] sm:$0xff] }
  0xb6   :  { %1179 = vmatprep.subr.bf16.mxu0 %v1318_v55  ;;  %v87_v55 = vld [vmem:[#allocation5 + $0x158] sm:$0xff] }
  0xb7   :  { %v1312_v41 = vcombine.high %v79_v54, %v87_v55  ;;  %v1311_v0 = vcombine.low %v79_v54, %v87_v55 }
  0xbb   :  { %1020 = vmatpush1.bf16.xpose.msra.mxu1 %v1309_v60  ;;  %v1320_v60 = vcombine.high %v83_v56, %v91_v57 }
  0xbc   :  { %1021 = vmatprep.subr.bf16.mxu1 %v1326_v62  ;;  %v99_v62 = vld [vmem:[#allocation5 + $0x1b8] sm:$0xff] }
  0xbd   :  { %1180 = vmatpush1.bf16.xpose.msra.mxu0 %v1317_v61  ;;  %v103_v61 = vld [vmem:[#allocation5 + $0x1d8] sm:$0xff] }
  0xbe   :  { %1181 = vmatprep.subr.bf16.mxu0 %v1334_v63  ;;  %v107_v63 = vld [vmem:[#allocation5 + $0x1f8] sm:$0xff]  ;;  %v1328_v2 = vcombine.high %v95_v29, %v103_v61  ;;  %v1327_v8 = vcombine.low %v95_v29, %v103_v61 }
  0xbf   :  { %v1336_v3 = vcombine.high %v99_v62, %v107_v63  ;;  %v1335_v9 = vcombine.low %v99_v62, %v107_v63 }
  0xc3   :  { %1022 = vmatpush1.bf16.xpose.msra.mxu1 %v1325_v4  ;;  %v111_v4 = vld [vmem:[#allocation5 + $0x218] sm:$0xff] }
  0xc4   :  { %1023 = vmatprep.subr.bf16.mxu1 %v1342_v6  ;;  %v115_v6 = vld [vmem:[#allocation5 + $0x238] sm:$0xff] }
  0xc5   :  { %1182 = vmatpush1.bf16.xpose.msra.mxu0 %v1333_v5  ;;  %v119_v5 = vld [vmem:[#allocation5 + $0x258] sm:$0xff] }
  0xc6   :  { %1183 = vmatprep.subr.bf16.mxu0 %v1350_v7  ;;  %v123_v7 = vld [vmem:[#allocation5 + $0x278] sm:$0xff]  ;;  %v1344_v10 = vcombine.high %v111_v4, %v119_v5  ;;  %v1343_v16 = vcombine.low %v111_v4, %v119_v5 }
  0xc7   :  { %v1352_v11 = vcombine.high %v115_v6, %v123_v7  ;;  %v1351_v17 = vcombine.low %v115_v6, %v123_v7 }
  0xcb   :  { %1024 = vmatpush1.bf16.xpose.msra.mxu1 %v1341_v12  ;;  %v127_v12 = vld [vmem:[#allocation5 + $0x298] sm:$0xff] }
  0xcc   :  { %1025 = vmatprep.subr.bf16.mxu1 %v1358_v14  ;;  %v131_v14 = vld [vmem:[#allocation5 + $0x2b8] sm:$0xff] }
  0xcd   :  { %1184 = vmatpush1.bf16.xpose.msra.mxu0 %v1349_v13  ;;  %v135_v13 = vld [vmem:[#allocation5 + $0x2d8] sm:$0xff] }
  0xce   :  { %1185 = vmatprep.subr.bf16.mxu0 %v1366_v15  ;;  %v139_v15 = vld [vmem:[#allocation5 + $0x2f8] sm:$0xff]  ;;  %v1360_v18 = vcombine.high %v127_v12, %v135_v13  ;;  %v1359_v25 = vcombine.low %v127_v12, %v135_v13 }
  0xcf   :  { %v1368_v19 = vcombine.high %v131_v14, %v139_v15  ;;  %v1367_v26 = vcombine.low %v131_v14, %v139_v15 }
  0xd3   :  { %1026 = vmatpush1.bf16.xpose.msra.mxu1 %v1357_v20  ;;  %v143_v20 = vld [vmem:[#allocation5 + $0x318] sm:$0xff] }
  0xd4   :  { %1027 = vmatprep.subr.bf16.mxu1 %v1374_v22  ;;  %v147_v22 = vld [vmem:[#allocation5 + $0x338] sm:$0xff] }
  0xd5   :  { %1186 = vmatpush1.bf16.xpose.msra.mxu0 %v1365_v21  ;;  %v151_v21 = vld [vmem:[#allocation5 + $0x358] sm:$0xff] }
  0xd6   :  { %1187 = vmatprep.subr.bf16.mxu0 %v1382_v24  ;;  %v155_v24 = vld [vmem:[#allocation5 + $0x378] sm:$0xff]  ;;  %v1376_v28 = vcombine.high %v143_v20, %v151_v21  ;;  %v1375_v39 = vcombine.low %v143_v20, %v151_v21 }
  0xd7   :  { %v1384_v32 = vcombine.high %v147_v22, %v155_v24  ;;  %v1383_v42 = vcombine.low %v147_v22, %v155_v24 }
  0xdb   :  { %1028 = vmatpush1.bf16.xpose.msra.mxu1 %v1373_v33  ;;  %v159_v33 = vld [vmem:[#allocation5 + $0x398] sm:$0xff] }
  0xdc   :  { %1029 = vmatprep.subr.bf16.mxu1 %v1390_v30  ;;  %v163_v30 = vld [vmem:[#allocation5 + $0x3b8] sm:$0xff] }
  0xdd   :  { %1188 = vmatpush1.bf16.xpose.msra.mxu0 %v1381_v34  ;;  %v167_v34 = vld [vmem:[#allocation5 + $0x3d8] sm:$0xff] }
  0xde   :  { %1189 = vmatprep.subr.bf16.mxu0 %v1398_v37  ;;  %v171_v37 = vld [vmem:[#allocation5 + $0x3f8] sm:$0xff]  ;;  %v1392_v43 = vcombine.high %v159_v33, %v167_v34 }
  0xdf   :  { %v1400_v44 = vcombine.high %v163_v30, %v171_v37 }
  0xe3   :  { %1030 = vmatpush1.bf16.xpose.msra.mxu1 %v1389_v45  ;;  %v1391_v45 = vcombine.low %v159_v33, %v167_v34 }
  0xe4   :  { %1055 = vmatprep.subr.bf16.mxu1 %v1280_v47  ;;  %v227_v47 = vcombine.high %v1605_v36, %v1605_v36 }
  0xe5   :  { %1190 = vmatpush1.bf16.xpose.msra.mxu0 %v1397_v46  ;;  %v1399_v46 = vcombine.low %v163_v30, %v171_v37 }
  0xe6   :  { %1215 = vmatprep.subr.bf16.mxu0 %v1288_v38  ;;  %v276_v38 = vcombine.high %v1619_v31, %v1619_v31 }
  0xea   :  { %1048 = vmatmul.mubr.bf16.vlgmr.msra.gmra.mrb[0].mxu1 %v1605_v36 }
  0xeb   :  { %1056 = vmatpush1.bf16.xpose.msra.mxu1 %v1279_v23  ;;  %1087 = vmatprep.mubr.bf16.mxu1 %v229_v53 }
  0xec   :  { %1208 = vmatmul.mubr.bf16.vlgmr.msra.gmra.mrb[0].mxu0 %v1619_v31  ;;  %1057 = vmatprep.subr.bf16.mxu1 %v1296_v27 }
  0xed   :  { %1216 = vmatpush1.bf16.xpose.msra.mxu0 %v1287_v51  ;;  %1247 = vmatprep.mubr.bf16.mxu0 %v278_v35 }
  0xee   :  { %1217 = vmatprep.subr.bf16.mxu0 %v1304_v52 }
  0xf3   :  { %1058 = vmatpush1.bf16.xpose.msra.mxu1 %v1295_v58 }
  0xf4   :  { %1059 = vmatprep.subr.bf16.mxu1 %v1312_v41 }
  0xf5   :  { %1218 = vmatpush1.bf16.xpose.msra.mxu0 %v1303_v59 }
  0xf6   :  { %1219 = vmatprep.subr.bf16.mxu0 %v1320_v60 }
  0xfb   :  { %1060 = vmatpush1.bf16.xpose.msra.mxu1 %v1311_v0 }
  0xfc   :  { %1061 = vmatprep.subr.bf16.mxu1 %v1328_v2 }
  0xfd   :  { %1220 = vmatpush1.bf16.xpose.msra.mxu0 %v1319_v1 }
  0xfe   :  { %1221 = vmatprep.subr.bf16.mxu0 %v1336_v3 }
 0x103   :  { %1062 = vmatpush1.bf16.xpose.msra.mxu1 %v1327_v8 }
 0x104   :  { %1063 = vmatprep.subr.bf16.mxu1 %v1344_v10 }
 0x105   :  { %1222 = vmatpush1.bf16.xpose.msra.mxu0 %v1335_v9 }
 0x106   :  { %1223 = vmatprep.subr.bf16.mxu0 %v1352_v11 }
 0x10b   :  { %1064 = vmatpush1.bf16.xpose.msra.mxu1 %v1343_v16 }
 0x10c   :  { %1065 = vmatprep.subr.bf16.mxu1 %v1360_v18 }
 0x10d   :  { %1224 = vmatpush1.bf16.xpose.msra.mxu0 %v1351_v17 }
 0x10e   :  { %1225 = vmatprep.subr.bf16.mxu0 %v1368_v19 }
 0x113   :  { %1066 = vmatpush1.bf16.xpose.msra.mxu1 %v1359_v25 }
 0x114   :  { %1067 = vmatprep.subr.bf16.mxu1 %v1376_v28 }
 0x115   :  { %1226 = vmatpush1.bf16.xpose.msra.mxu0 %v1367_v26 }
 0x116   :  { %1227 = vmatprep.subr.bf16.mxu0 %v1384_v32 }
 0x11b   :  { %1068 = vmatpush1.bf16.xpose.msra.mxu1 %v1375_v39 }
 0x11c   :  { %1069 = vmatprep.subr.bf16.mxu1 %v1392_v43 }
 0x11d   :  { %1228 = vmatpush1.bf16.xpose.msra.mxu0 %v1383_v42 }
 0x11e   :  { %1229 = vmatprep.subr.bf16.mxu0 %v1400_v44 }
 0x123   :  { %1070 = vmatpush1.bf16.xpose.msra.mxu1 %v1391_v45 }
 0x125   :  { %1230 = vmatpush1.bf16.xpose.msra.mxu0 %v1399_v46 }
 0x12a   :  { %1088 = vmatmul.mubr.bf16.vlgmr.msra.gmra.mrb[0].mxu1 %v227_v47 }
 0x12c   :  { %1248 = vmatmul.mubr.bf16.vlgmr.msra.gmra.mrb[0].mxu0 %v276_v38 }
 0x1fd   :  { %v1089_v49 = vpop.f32.mrb[0].mxu1 }
 0x1fe   :  { %v1401_v40 = vadd.f32 %v1272_v48, %v1089_v49  ;;  %v1091_v23 = vpop.f32.mrb[1].mxu1 }
 0x1ff   :  { %v1249_v50 = vpop.f32.mrb[0].mxu0  ;;  %v1092_v27 = vpop.f32.mrb[2].mxu1 }
 0x200   :  { %v1251_v51 = vpop.f32.mrb[1].mxu0  ;;  %v1402_v52 = vadd.f32 %v1401_v40, %v1249_v50  ;;  %v1093_v36 = vpop.f32.mrb[3].mxu1 }
 0x201   :  { %v1252_v53 = vpop.f32.mrb[2].mxu0 }
 0x202   :  { %v1253_v35 = vpop.f32.mrb[3].mxu0  ;;  %1255 = vst [vmem:[#allocation7] sm:$0x3] %v1402_v52 }
 0x203   :  { %1490 = shalt.err (!%p1487_p6)
}
 0x204   :  { %s1491_s15 = scalar_lea.hbm %s1656_s3, 32 }
 0x205   :  { %p1492_p7 = scmp.ne.s32.totalorder %s1656_s3, %s1491_s15  ;;  %p1495_p8 = scmp.lt.u32.totalorder %s1491_s15, %s1656_s3 }
 0x207   :  { %p1497_p9 = pnand %p1495_p8, %p1492_p7 }
 0x209   :  { %1500 = shalt.err (!%p1497_p9)
}
 0x20a   :  { %1265 = dma.vmem_to_hbm [thread:$0]  %s1263_s12, 32, %s1656_s3, [#allocation4]  }
 0x20b   :  { %1505 = dma.done.wait [#allocation4], 32  }
 0x20c   :  { %1506 = vsyncadd [#allocation4], 4294967264 }
 0x20d   :  { %1269 = vsyncpa [#allocation3], 1 }
 0x20e   :  { %1270 = vsyncpa [#allocation6], 1 }
 0x20f   :  { %1271 = vsyncpa [#allocation4], 1 }

</bundles_post_ra>
